<compile_context>
chip_gen: v5e
topology: v5e:2x2
jax: 0.10.0
libtpu: 0.0.40
codegen_flags: <defaults>
</compile_context>

<pallas_src>
import functools
import math

import jax
import jax.numpy as jnp
from jax.experimental import pallas as pl
from jax.experimental.pallas import tpu as pltpu


# ---------------------------------------------------------------------------
# Helpers
# ---------------------------------------------------------------------------

def _layer_norm_f32(x, w, b, eps):
    x32 = x.astype(jnp.float32)
    mu = jnp.mean(x32, axis=-1, keepdims=True)
    var = jnp.mean((x32 - mu) ** 2, axis=-1, keepdims=True)
    return (x32 - mu) * jax.lax.rsqrt(var + eps) * w.astype(jnp.float32) + b.astype(jnp.float32)


def _const_spec(arr):
    """Full-array BlockSpec with a constant index map (resident weights).

    The block index never changes, so double buffering is pure VMEM waste ->
    request single buffering when the pipeline_mode API is available.
    """
    nd = arr.ndim
    idx = lambda *_args, _nd=nd: (0,) * _nd
    if hasattr(pl, "Buffered"):
        try:
            return pl.BlockSpec(arr.shape, idx, pipeline_mode=pl.Buffered(1))
        except (TypeError, ValueError):
            pass
    return pl.BlockSpec(arr.shape, idx)


def _mosaic_params(**kw):
    cls = getattr(pltpu, "CompilerParams", None) or getattr(pltpu, "TPUCompilerParams", None)
    if cls is None:
        return None
    try:
        return cls(**kw)
    except TypeError:
        kw.pop("vmem_limit_bytes", None)
        return cls(**kw)


def _vmem_capacity_bytes():
    try:
        return int(pltpu.get_tpu_info().vmem_capacity_bytes)
    except Exception:
        return 128 * 1024 * 1024


# ---------------------------------------------------------------------------
# Kernel 1: per-batch K/V precompute (hoisted out of the seq-tile loop)
# ---------------------------------------------------------------------------

def _kv_project_kernel(kv_ref, ln1w_ref, ln1b_ref, wk_ref, wv_ref, k_ref, v_ref,
                       *, num_heads, eps, apply_ln, compute_dtype):
    """Optional LayerNorm1 + per-head K/V projections, once per batch.

    Outputs are (1, H, M, hd): head-major layout so the attention kernel never
    has to slice heads out of a lane-dense tensor.
    """
    kv = kv_ref[0]                                        # (M, Dkv)
    if apply_ln:                                          # self-attention: K/V source is norm1(query)
        kv = _layer_norm_f32(kv, ln1w_ref[0], ln1b_ref[0], eps)
    kv = kv.astype(compute_dtype)
    for h in range(num_heads):                            # 2-D MXU matmuls; head split lives in the weights
        k_ref[0, h] = jnp.dot(kv, wk_ref[h], preferred_element_type=jnp.float32).astype(k_ref.dtype)
        v_ref[0, h] = jnp.dot(kv, wv_ref[h], preferred_element_type=jnp.float32).astype(v_ref.dtype)


# ---------------------------------------------------------------------------
# Kernel 2: fused LN1 -> attention -> project -> residual -> LN2 -> MLP -> residual
# ---------------------------------------------------------------------------

def _transformer_layer_kernel(
    q_ref, k_ref, v_ref,
    ln1w_ref, ln1b_ref, wq_ref, wp_ref, bp_ref,
    ln2w_ref, ln2b_ref, w1_ref, b1_ref, w2_ref, b2_ref,
    o_ref,
    *, num_heads, head_size, eps, compute_dtype, approx_recip):
    """One (batch, seq-tile) grid step. K/V arrive precomputed in (H, M, hd) layout."""
    x = q_ref[0]                                          # (TN, D)

    # ---- LayerNorm 1 (stats in f32) ----
    xn = _layer_norm_f32(x, ln1w_ref[0], ln1b_ref[0], eps).astype(compute_dtype)

    # ---- Per-head Q from pre-split weights (full-depth D contractions, no lane slicing);
    #      softmax scale folded into Q once ----
    scale = float(head_size) ** -0.5
    q3 = jnp.stack(
        [jnp.dot(xn, wq_ref[h], preferred_element_type=jnp.float32) * scale
         for h in range(num_heads)], axis=0).astype(compute_dtype)         # (H, TN, hd)

    k3 = k_ref[0]                                         # (H, M, hd), compute dtype
    v3 = v_ref[0]

    # ---- Head-batched attention on the MXU ----
    # TODO(synk): optional attention `mask` (masked_fill with -inf) not implemented.
    s = jnp.einsum("hnd,hmd->hnm", q3, k3, preferred_element_type=jnp.float32)   # (H, TN, M) f32
    s = s - jnp.max(s, axis=-1, keepdims=True)
    p = jnp.exp(s)
    l = jnp.sum(p, axis=-1, keepdims=True)                # (H, TN, 1)
    o3 = jnp.einsum("hnm,hmd->hnd", p.astype(compute_dtype), v3,
                    preferred_element_type=jnp.float32)   # (H, TN, hd) f32
    o3 = (o3 * pl.reciprocal(l, approx=approx_recip)).astype(compute_dtype)  # deferred softmax norm

    # ---- Output projection: per-head accumulation (no minor-axis concat of heads) ----
    attn = jnp.dot(o3[0], wp_ref[0], preferred_element_type=jnp.float32)
    for h in range(1, num_heads):
        attn = attn + jnp.dot(o3[h], wp_ref[h], preferred_element_type=jnp.float32)
    attn = attn + bp_ref[0].astype(jnp.float32)

    x1 = x.astype(jnp.float32) + attn                     # residual 1 (f32)

    # ---- LayerNorm 2 + MLP ----
    xn2 = _layer_norm_f32(x1, ln2w_ref[0], ln2b_ref[0], eps).astype(compute_dtype)
    h1 = (jnp.dot(xn2, w1_ref[...], preferred_element_type=jnp.float32)
          + b1_ref[0].astype(jnp.float32))
    h1 = jnp.maximum(h1, 0.0).astype(compute_dtype)       # relu
    mlp = (jnp.dot(h1, w2_ref[...], preferred_element_type=jnp.float32)
           + b2_ref[0].astype(jnp.float32))

    o_ref[0] = (x1 + mlp).astype(o_ref.dtype)             # residual 2


# ---------------------------------------------------------------------------
# Wrapper
# ---------------------------------------------------------------------------

def transformer_layer(query, key_value, params, *, num_heads, eps=1e-5,
                      block_n=None, compute_dtype=None, approx_recip=True):
    B, N, D = query.shape
    assert D % num_heads == 0
    hd = D // num_heads
    self_kv = key_value is None
    kv_src = query if self_kv else key_value
    _, M, Dkv = kv_src.shape

    compute_dtype = jnp.dtype(compute_dtype) if compute_dtype is not None else query.dtype
    cast = lambda w: w.astype(compute_dtype)

    # --- Wrapper-side weight re-layout: per-head projection matrices --------------
    # PyTorch column order of to_keys_values is [K (all heads) | V (all heads)].
    wq_h = cast(params["wq"].reshape(D, num_heads, hd).transpose(1, 0, 2))            # (H, D, hd)
    wk_h = cast(params["wkv"][:, :D].reshape(Dkv, num_heads, hd).transpose(1, 0, 2))  # (H, Dkv, hd)
    wv_h = cast(params["wkv"][:, D:].reshape(Dkv, num_heads, hd).transpose(1, 0, 2))  # (H, Dkv, hd)
    wp_h = cast(params["wp"].reshape(num_heads, hd, D))                               # (H, hd, D)
    w1c, w2c = cast(params["w1"]), cast(params["w2"])

    vmem_cap = _vmem_capacity_bytes()
    vmem_budget = max(vmem_cap - 16 * 1024 * 1024, vmem_cap // 2)  # leave compiler headroom

    # --- K/V precompute: once per batch, head-major layout -------------------------
    kv_weights = (params["ln1_w"], params["ln1_b"], wk_h, wv_h)
    kv_kernel = functools.partial(
        _kv_project_kernel, num_heads=num_heads, eps=eps, apply_ln=self_kv,
        compute_dtype=compute_dtype)
    k3, v3 = pl.pallas_call(
        kv_kernel,
        out_shape=(jax.ShapeDtypeStruct((B, num_heads, M, hd), compute_dtype),
                   jax.ShapeDtypeStruct((B, num_heads, M, hd), compute_dtype)),
        grid=(B,),
        in_specs=[pl.BlockSpec((1, M, Dkv), lambda b: (b, 0, 0))]
                + [_const_spec(w) for w in kv_weights],
        out_specs=(pl.BlockSpec((1, num_heads, M, hd), lambda b: (b, 0, 0, 0)),
                   pl.BlockSpec((1, num_heads, M, hd), lambda b: (b, 0, 0, 0))),
        compiler_params=_mosaic_params(dimension_semantics=("parallel",)),
    )(kv_src, *kv_weights)

    # --- Sequence tiling: generation-aware default, dtype-correct sublane multiple --
    sub = max(8, 32 // compute_dtype.itemsize)            # 8 (f32) / 16 (bf16) / 32 (int8)
    if block_n is None:
        block_n = 256 if vmem_cap <= 64 * 1024 * 1024 else 512   # smaller on v7x (64 MiB VMEM)
    tn = min(block_n, N)
    if tn != N:
        tn = max(sub, (tn // sub) * sub)
    n_pad = -(-N // tn) * tn
    grid_n = n_pad // tn
    # v7x shards "parallel" grid axes across 2 TensorCores: prefer an even step count.
    if (B * grid_n) % 2 == 1 and tn > sub:
        tn_half = max(sub, ((tn // 2) // sub) * sub)
        if tn_half < tn:
            tn = tn_half
            n_pad = -(-N // tn) * tn
            grid_n = n_pad // tn
    q_in = query if n_pad == N else jnp.pad(query, ((0, 0), (0, n_pad - N), (0, 0)))
    grid = (B, grid_n)

    weights = (params["ln1_w"], params["ln1_b"], wq_h, wp_h, params["bp"],
               params["ln2_w"], params["ln2_b"], w1c, params["b1"], w2c, params["b2"])

    # --- VMEM budget: rough but generation-aware; always set explicitly -------------
    def _r(x, m):
        return -(-x // m) * m
    cdt, qdt = compute_dtype.itemsize, query.dtype.itemsize
    w_bytes = sum(int(math.prod(w.shape)) * w.dtype.itemsize for w in weights)
    act_bytes = 2 * 2 * _r(tn, 8) * _r(D, 128) * qdt                       # q + out, dbl-buffered
    kv_bytes = 2 * 2 * num_heads * _r(M, 8) * _r(hd, 128) * cdt            # k3 + v3, dbl-buffered
    scratch = 4 * (num_heads * tn * (_r(M, 128) + 2 * _r(hd, 128))         # scores + q3/o3
                   + tn * (_r(4 * D, 128) + 4 * _r(D, 128)))               # mlp hidden + f32 temps
    est = w_bytes + act_bytes + kv_bytes + scratch
    vmem_limit = int(min(vmem_budget, max(est * 3 // 2, 32 * 1024 * 1024)))

    kernel = functools.partial(
        _transformer_layer_kernel, num_heads=num_heads, head_size=hd, eps=eps,
        compute_dtype=compute_dtype, approx_recip=approx_recip)

    out = pl.pallas_call(
        kernel,
        out_shape=jax.ShapeDtypeStruct((B, n_pad, D), query.dtype),
        grid=grid,
        in_specs=[
            pl.BlockSpec((1, tn, D), lambda b, n: (b, n, 0)),
            pl.BlockSpec((1, num_heads, M, hd), lambda b, n: (b, 0, 0, 0)),
            pl.BlockSpec((1, num_heads, M, hd), lambda b, n: (b, 0, 0, 0)),
        ] + [_const_spec(w) for w in weights],
        out_specs=pl.BlockSpec((1, tn, D), lambda b, n: (b, n, 0)),
        compiler_params=_mosaic_params(
            dimension_semantics=("parallel", "parallel"),
            vmem_limit_bytes=vmem_limit),
    )(q_in, k3, v3, *weights)
    return out[:, :N] if n_pad != N else out


# ---------------------------------------------------------------------------
# Pure-JAX reference (mirrors the PyTorch forward) and parameter init
# ---------------------------------------------------------------------------

def _reference(query, key_value, params, *, num_heads, eps=1e-5):
    B, N, D = query.shape
    hd = D // num_heads
    x = query
    mu = jnp.mean(x, -1, keepdims=True)
    var = jnp.mean((x - mu) ** 2, -1, keepdims=True)
    xn = (x - mu) * jax.lax.rsqrt(var + eps) * params["ln1_w"][0] + params["ln1_b"][0]
    kv = xn if key_value is None else key_value
    q = (xn @ params["wq"]).reshape(B, N, num_heads, hd)
    kvp = (kv @ params["wkv"]).reshape(B, kv.shape[1], 2, num_heads, hd)
    k, v = kvp[:, :, 0], kvp[:, :, 1]
    att = jnp.einsum("bnhd,bmhd->bnmh", q, k) * (hd ** -0.5)
    att = jax.nn.softmax(att, axis=2)
    out = jnp.einsum("bnmh,bmhd->bnhd", att, v).reshape(B, N, D)
    out = out @ params["wp"] + params["bp"][0]
    x1 = x + out
    mu2 = jnp.mean(x1, -1, keepdims=True)
    var2 = jnp.mean((x1 - mu2) ** 2, -1, keepdims=True)
    xn2 = (x1 - mu2) * jax.lax.rsqrt(var2 + eps) * params["ln2_w"][0] + params["ln2_b"][0]
    h1 = jnp.maximum(xn2 @ params["w1"] + params["b1"][0], 0.0)
    return x1 + h1 @ params["w2"] + params["b2"][0]


def _init_params(key, query_size, key_value_size, num_heads, mlp_ratio=4.0):
    D, Dkv = query_size, key_value_size
    H = int(D * mlp_ratio)
    ks = jax.random.split(key, 8)
    s = 0.02
    return {
        "ln1_w": jnp.ones((1, D), jnp.float32),
        "ln1_b": jnp.zeros((1, D), jnp.float32),
        "wq":   s * jax.random.normal(ks[0], (D, D), jnp.float32),
        "wkv":  s * jax.random.normal(ks[1], (Dkv, 2 * D), jnp.float32),
        "wp":   s * jax.random.normal(ks[2], (D, D), jnp.float32),
        "bp":   s * jax.random.normal(ks[3], (1, D), jnp.float32),
        "ln2_w": jnp.ones((1, D), jnp.float32),
        "ln2_b": jnp.zeros((1, D), jnp.float32),
        "w1":   s * jax.random.normal(ks[4], (D, H), jnp.float32),
        "b1":   s * jax.random.normal(ks[5], (1, H), jnp.float32),
        "w2":   s * jax.random.normal(ks[6], (H, D), jnp.float32),
        "b2":   s * jax.random.normal(ks[7], (1, D), jnp.float32),
    }


if __name__ == "__main__":
    key = jax.random.PRNGKey(0)
    k_q, k_kv, k_p, k_q2, k_kv2 = jax.random.split(key, 5)

    B, D, Dkv, H = 2, 32, 32, 4
    params = _init_params(k_p, D, Dkv, H)

    checks = []

    # Config 1: single sequence tile; cross-attention and self-attention paths.
    N, M = 8, 8
    query = jax.random.normal(k_q, (B, N, D), jnp.float32)
    key_value = jax.random.normal(k_kv, (B, M, Dkv), jnp.float32)
    out = jax.block_until_ready(transformer_layer(query, key_value, params, num_heads=H))
    checks.append((out, _reference(query, key_value, params, num_heads=H), 1e-2))
    out = jax.block_until_ready(transformer_layer(query, None, params, num_heads=H))
    checks.append((out, _reference(query, None, params, num_heads=H), 1e-2))

    # Config 2: N not a multiple of the tile -> exercises sequence tiling + padding.
    N2, M2 = 12, 8
    query2 = jax.random.normal(k_q2, (B, N2, D), jnp.float32)
    key_value2 = jax.random.normal(k_kv2, (B, M2, Dkv), jnp.float32)
    out = jax.block_until_ready(
        transformer_layer(query2, key_value2, params, num_heads=H, block_n=8))
    checks.append((out, _reference(query2, key_value2, params, num_heads=H), 1e-2))
    out = jax.block_until_ready(
        transformer_layer(query2, None, params, num_heads=H, block_n=8))
    checks.append((out, _reference(query2, None, params, num_heads=H), 1e-2))

    # Config 3: bf16 compute-dtype knob (matmul operands bf16, stats/softmax/residuals f32).
    out = jax.block_until_ready(
        transformer_layer(query, key_value, params, num_heads=H, compute_dtype=jnp.bfloat16))
    checks.append((out, _reference(query, key_value, params, num_heads=H), 3e-2))

    for o, r, tol in checks:
        err = float(jnp.max(jnp.abs(o - r)))
        assert err < tol, f"mismatch vs reference: max abs err {err} (tol {tol})"
    print("KERNEL_OK")
</pallas_src>

<mosaic_0001>
module attributes {stable_mosaic.version = 11 : i64} {
  func.func @_kv_project_kernel(%arg0: i32, %arg1: memref<1x8x32xf32, #tpu.memory_space<vmem>>, %arg2: memref<1x32xf32, #tpu.memory_space<vmem>>, %arg3: memref<1x32xf32, #tpu.memory_space<vmem>>, %arg4: memref<4x32x8xf32, #tpu.memory_space<vmem>>, %arg5: memref<4x32x8xf32, #tpu.memory_space<vmem>>, %arg6: memref<1x4x8x8xf32, #tpu.memory_space<vmem>>, %arg7: memref<1x4x8x8xf32, #tpu.memory_space<vmem>>) attributes {dimension_semantics = [#tpu.dimension_semantics<parallel>], iteration_bounds = array<i64: 2>, scalar_prefetch = 0 : i64, scratch_operands = 0 : i64, tpu.core_type = #tpu.core_type<tc>, window_params = [{transform_indices = @transform_0, window_bounds = array<i64: 1, 8, 32>}, {pipeline_mode = #tpu.pipeline_mode<synchronous>, transform_indices = @transform_1, window_bounds = array<i64: 1, 32>}, {pipeline_mode = #tpu.pipeline_mode<synchronous>, transform_indices = @transform_2, window_bounds = array<i64: 1, 32>}, {pipeline_mode = #tpu.pipeline_mode<synchronous>, transform_indices = @transform_3, window_bounds = array<i64: 4, 32, 8>}, {pipeline_mode = #tpu.pipeline_mode<synchronous>, transform_indices = @transform_4, window_bounds = array<i64: 4, 32, 8>}, {transform_indices = @transform_5, window_bounds = array<i64: 1, 4, 8, 8>}, {transform_indices = @transform_6, window_bounds = array<i64: 1, 4, 8, 8>}]} {
    %c0 = arith.constant 0 : index
    %c0_0 = arith.constant 0 : index
    %c0_1 = arith.constant 0 : index
    %0 = vector.load %arg1[%c0, %c0_0, %c0_1] : memref<1x8x32xf32, #tpu.memory_space<vmem>>, vector<1x8x32xf32>
    %1 = vector.shape_cast %0 : vector<1x8x32xf32> to vector<8x32xf32>
    %c0_2 = arith.constant 0 : index
    %c0_3 = arith.constant 0 : index
    %c0_4 = arith.constant 0 : index
    %2 = vector.load %arg4[%c0_2, %c0_3, %c0_4] : memref<4x32x8xf32, #tpu.memory_space<vmem>>, vector<1x32x8xf32>
    %3 = vector.shape_cast %2 : vector<1x32x8xf32> to vector<32x8xf32>
    %cst = arith.constant dense<0.000000e+00> : vector<8x8xf32>
    %4 = tpu.matmul %1, %3, %cst {dimension_numbers = #tpu.dot_dimension_numbers<[1], [0], [0], [1], [0, 0, 1, 1], [], []>} : vector<8x32xf32>, vector<32x8xf32>, vector<8x8xf32> -> vector<8x8xf32>
    %c0_5 = arith.constant 0 : index
    %c0_6 = arith.constant 0 : index
    %c0_7 = arith.constant 0 : index
    %c0_8 = arith.constant 0 : index
    %5 = vector.load %arg6[%c0_5, %c0_6, %c0_7, %c0_8] : memref<1x4x8x8xf32, #tpu.memory_space<vmem>>, vector<1x1x8x8xf32>
    %6 = vector.shape_cast %5 : vector<1x1x8x8xf32> to vector<8x8xf32>
    %7 = vector.shape_cast %4 : vector<8x8xf32> to vector<1x1x8x8xf32>
    tpu.vector_store %arg6[%c0_5, %c0_6, %c0_7, %c0_8], %7 {strides = array<i32>} : memref<1x4x8x8xf32, #tpu.memory_space<vmem>>, vector<1x1x8x8xf32>,
    %c0_9 = arith.constant 0 : index
    %c0_10 = arith.constant 0 : index
    %c0_11 = arith.constant 0 : index
    %8 = vector.load %arg5[%c0_9, %c0_10, %c0_11] : memref<4x32x8xf32, #tpu.memory_space<vmem>>, vector<1x32x8xf32>
    %9 = vector.shape_cast %8 : vector<1x32x8xf32> to vector<32x8xf32>
    %cst_12 = arith.constant dense<0.000000e+00> : vector<8x8xf32>
    %10 = tpu.matmul %1, %9, %cst_12 {dimension_numbers = #tpu.dot_dimension_numbers<[1], [0], [0], [1], [0, 0, 1, 1], [], []>} : vector<8x32xf32>, vector<32x8xf32>, vector<8x8xf32> -> vector<8x8xf32>
    %c0_13 = arith.constant 0 : index
    %c0_14 = arith.constant 0 : index
    %c0_15 = arith.constant 0 : index
    %c0_16 = arith.constant 0 : index
    %11 = vector.load %arg7[%c0_13, %c0_14, %c0_15, %c0_16] : memref<1x4x8x8xf32, #tpu.memory_space<vmem>>, vector<1x1x8x8xf32>
    %12 = vector.shape_cast %11 : vector<1x1x8x8xf32> to vector<8x8xf32>
    %13 = vector.shape_cast %10 : vector<8x8xf32> to vector<1x1x8x8xf32>
    tpu.vector_store %arg7[%c0_13, %c0_14, %c0_15, %c0_16], %13 {strides = array<i32>} : memref<1x4x8x8xf32, #tpu.memory_space<vmem>>, vector<1x1x8x8xf32>,
    %c1 = arith.constant 1 : index
    %c0_17 = arith.constant 0 : index
    %c0_18 = arith.constant 0 : index
    %14 = vector.load %arg4[%c1, %c0_17, %c0_18] : memref<4x32x8xf32, #tpu.memory_space<vmem>>, vector<1x32x8xf32>
    %15 = vector.shape_cast %14 : vector<1x32x8xf32> to vector<32x8xf32>
    %cst_19 = arith.constant dense<0.000000e+00> : vector<8x8xf32>
    %16 = tpu.matmul %1, %15, %cst_19 {dimension_numbers = #tpu.dot_dimension_numbers<[1], [0], [0], [1], [0, 0, 1, 1], [], []>} : vector<8x32xf32>, vector<32x8xf32>, vector<8x8xf32> -> vector<8x8xf32>
    %c0_20 = arith.constant 0 : index
    %c1_21 = arith.constant 1 : index
    %c0_22 = arith.constant 0 : index
    %c0_23 = arith.constant 0 : index
    %17 = vector.load %arg6[%c0_20, %c1_21, %c0_22, %c0_23] : memref<1x4x8x8xf32, #tpu.memory_space<vmem>>, vector<1x1x8x8xf32>
    %18 = vector.shape_cast %17 : vector<1x1x8x8xf32> to vector<8x8xf32>
    %19 = vector.shape_cast %16 : vector<8x8xf32> to vector<1x1x8x8xf32>
    tpu.vector_store %arg6[%c0_20, %c1_21, %c0_22, %c0_23], %19 {strides = array<i32>} : memref<1x4x8x8xf32, #tpu.memory_space<vmem>>, vector<1x1x8x8xf32>,
    %c1_24 = arith.constant 1 : index
    %c0_25 = arith.constant 0 : index
    %c0_26 = arith.constant 0 : index
    %20 = vector.load %arg5[%c1_24, %c0_25, %c0_26] : memref<4x32x8xf32, #tpu.memory_space<vmem>>, vector<1x32x8xf32>
    %21 = vector.shape_cast %20 : vector<1x32x8xf32> to vector<32x8xf32>
    %cst_27 = arith.constant dense<0.000000e+00> : vector<8x8xf32>
    %22 = tpu.matmul %1, %21, %cst_27 {dimension_numbers = #tpu.dot_dimension_numbers<[1], [0], [0], [1], [0, 0, 1, 1], [], []>} : vector<8x32xf32>, vector<32x8xf32>, vector<8x8xf32> -> vector<8x8xf32>
    %c0_28 = arith.constant 0 : index
    %c1_29 = arith.constant 1 : index
    %c0_30 = arith.constant 0 : index
    %c0_31 = arith.constant 0 : index
    %23 = vector.load %arg7[%c0_28, %c1_29, %c0_30, %c0_31] : memref<1x4x8x8xf32, #tpu.memory_space<vmem>>, vector<1x1x8x8xf32>
    %24 = vector.shape_cast %23 : vector<1x1x8x8xf32> to vector<8x8xf32>
    %25 = vector.shape_cast %22 : vector<8x8xf32> to vector<1x1x8x8xf32>
    tpu.vector_store %arg7[%c0_28, %c1_29, %c0_30, %c0_31], %25 {strides = array<i32>} : memref<1x4x8x8xf32, #tpu.memory_space<vmem>>, vector<1x1x8x8xf32>,
    %c2 = arith.constant 2 : index
    %c0_32 = arith.constant 0 : index
    %c0_33 = arith.constant 0 : index
    %26 = vector.load %arg4[%c2, %c0_32, %c0_33] : memref<4x32x8xf32, #tpu.memory_space<vmem>>, vector<1x32x8xf32>
    %27 = vector.shape_cast %26 : vector<1x32x8xf32> to vector<32x8xf32>
    %cst_34 = arith.constant dense<0.000000e+00> : vector<8x8xf32>
    %28 = tpu.matmul %1, %27, %cst_34 {dimension_numbers = #tpu.dot_dimension_numbers<[1], [0], [0], [1], [0, 0, 1, 1], [], []>} : vector<8x32xf32>, vector<32x8xf32>, vector<8x8xf32> -> vector<8x8xf32>
    %c0_35 = arith.constant 0 : index
    %c2_36 = arith.constant 2 : index
    %c0_37 = arith.constant 0 : index
    %c0_38 = arith.constant 0 : index
    %29 = vector.load %arg6[%c0_35, %c2_36, %c0_37, %c0_38] : memref<1x4x8x8xf32, #tpu.memory_space<vmem>>, vector<1x1x8x8xf32>
    %30 = vector.shape_cast %29 : vector<1x1x8x8xf32> to vector<8x8xf32>
    %31 = vector.shape_cast %28 : vector<8x8xf32> to vector<1x1x8x8xf32>
    tpu.vector_store %arg6[%c0_35, %c2_36, %c0_37, %c0_38], %31 {strides = array<i32>} : memref<1x4x8x8xf32, #tpu.memory_space<vmem>>, vector<1x1x8x8xf32>,
    %c2_39 = arith.constant 2 : index
    %c0_40 = arith.constant 0 : index
    %c0_41 = arith.constant 0 : index
    %32 = vector.load %arg5[%c2_39, %c0_40, %c0_41] : memref<4x32x8xf32, #tpu.memory_space<vmem>>, vector<1x32x8xf32>
    %33 = vector.shape_cast %32 : vector<1x32x8xf32> to vector<32x8xf32>
    %cst_42 = arith.constant dense<0.000000e+00> : vector<8x8xf32>
    %34 = tpu.matmul %1, %33, %cst_42 {dimension_numbers = #tpu.dot_dimension_numbers<[1], [0], [0], [1], [0, 0, 1, 1], [], []>} : vector<8x32xf32>, vector<32x8xf32>, vector<8x8xf32> -> vector<8x8xf32>
    %c0_43 = arith.constant 0 : index
    %c2_44 = arith.constant 2 : index
    %c0_45 = arith.constant 0 : index
    %c0_46 = arith.constant 0 : index
    %35 = vector.load %arg7[%c0_43, %c2_44, %c0_45, %c0_46] : memref<1x4x8x8xf32, #tpu.memory_space<vmem>>, vector<1x1x8x8xf32>
    %36 = vector.shape_cast %35 : vector<1x1x8x8xf32> to vector<8x8xf32>
    %37 = vector.shape_cast %34 : vector<8x8xf32> to vector<1x1x8x8xf32>
    tpu.vector_store %arg7[%c0_43, %c2_44, %c0_45, %c0_46], %37 {strides = array<i32>} : memref<1x4x8x8xf32, #tpu.memory_space<vmem>>, vector<1x1x8x8xf32>,
    %c3 = arith.constant 3 : index
    %c0_47 = arith.constant 0 : index
    %c0_48 = arith.constant 0 : index
    %38 = vector.load %arg4[%c3, %c0_47, %c0_48] : memref<4x32x8xf32, #tpu.memory_space<vmem>>, vector<1x32x8xf32>
    %39 = vector.shape_cast %38 : vector<1x32x8xf32> to vector<32x8xf32>
    %cst_49 = arith.constant dense<0.000000e+00> : vector<8x8xf32>
    %40 = tpu.matmul %1, %39, %cst_49 {dimension_numbers = #tpu.dot_dimension_numbers<[1], [0], [0], [1], [0, 0, 1, 1], [], []>} : vector<8x32xf32>, vector<32x8xf32>, vector<8x8xf32> -> vector<8x8xf32>
    %c0_50 = arith.constant 0 : index
    %c3_51 = arith.constant 3 : index
    %c0_52 = arith.constant 0 : index
    %c0_53 = arith.constant 0 : index
    %41 = vector.load %arg6[%c0_50, %c3_51, %c0_52, %c0_53] : memref<1x4x8x8xf32, #tpu.memory_space<vmem>>, vector<1x1x8x8xf32>
    %42 = vector.shape_cast %41 : vector<1x1x8x8xf32> to vector<8x8xf32>
    %43 = vector.shape_cast %40 : vector<8x8xf32> to vector<1x1x8x8xf32>
    tpu.vector_store %arg6[%c0_50, %c3_51, %c0_52, %c0_53], %43 {strides = array<i32>} : memref<1x4x8x8xf32, #tpu.memory_space<vmem>>, vector<1x1x8x8xf32>,
    %c3_54 = arith.constant 3 : index
    %c0_55 = arith.constant 0 : index
    %c0_56 = arith.constant 0 : index
    %44 = vector.load %arg5[%c3_54, %c0_55, %c0_56] : memref<4x32x8xf32, #tpu.memory_space<vmem>>, vector<1x32x8xf32>
    %45 = vector.shape_cast %44 : vector<1x32x8xf32> to vector<32x8xf32>
    %cst_57 = arith.constant dense<0.000000e+00> : vector<8x8xf32>
    %46 = tpu.matmul %1, %45, %cst_57 {dimension_numbers = #tpu.dot_dimension_numbers<[1], [0], [0], [1], [0, 0, 1, 1], [], []>} : vector<8x32xf32>, vector<32x8xf32>, vector<8x8xf32> -> vector<8x8xf32>
    %c0_58 = arith.constant 0 : index
    %c3_59 = arith.constant 3 : index
    %c0_60 = arith.constant 0 : index
    %c0_61 = arith.constant 0 : index
    %47 = vector.load %arg7[%c0_58, %c3_59, %c0_60, %c0_61] : memref<1x4x8x8xf32, #tpu.memory_space<vmem>>, vector<1x1x8x8xf32>
    %48 = vector.shape_cast %47 : vector<1x1x8x8xf32> to vector<8x8xf32>
    %49 = vector.shape_cast %46 : vector<8x8xf32> to vector<1x1x8x8xf32>
    tpu.vector_store %arg7[%c0_58, %c3_59, %c0_60, %c0_61], %49 {strides = array<i32>} : memref<1x4x8x8xf32, #tpu.memory_space<vmem>>, vector<1x1x8x8xf32>,
    return
  }
  func.func @transform_0(%arg0: i32) -> (i32, i32, i32) {
    %c0_i32 = arith.constant 0 : i32
    %c0_i32_0 = arith.constant 0 : i32
    %c0_i32_1 = arith.constant 0 : i32
    return %arg0, %c0_i32, %c0_i32_0 : i32, i32, i32
  }
  func.func @transform_1(%arg0: i32) -> (i32, i32) {
    %c0_i32 = arith.constant 0 : i32
    %c0_i32_0 = arith.constant 0 : i32
    %c0_i32_1 = arith.constant 0 : i32
    return %c0_i32, %c0_i32_0 : i32, i32
  }
  func.func @transform_2(%arg0: i32) -> (i32, i32) {
    %c0_i32 = arith.constant 0 : i32
    %c0_i32_0 = arith.constant 0 : i32
    %c0_i32_1 = arith.constant 0 : i32
    return %c0_i32, %c0_i32_0 : i32, i32
  }
  func.func @transform_3(%arg0: i32) -> (i32, i32, i32) {
    %c0_i32 = arith.constant 0 : i32
    %c0_i32_0 = arith.constant 0 : i32
    %c0_i32_1 = arith.constant 0 : i32
    %c0_i32_2 = arith.constant 0 : i32
    return %c0_i32, %c0_i32_0, %c0_i32_1 : i32, i32, i32
  }
  func.func @transform_4(%arg0: i32) -> (i32, i32, i32) {
    %c0_i32 = arith.constant 0 : i32
    %c0_i32_0 = arith.constant 0 : i32
    %c0_i32_1 = arith.constant 0 : i32
    %c0_i32_2 = arith.constant 0 : i32
    return %c0_i32, %c0_i32_0, %c0_i32_1 : i32, i32, i32
  }
  func.func @transform_5(%arg0: i32) -> (i32, i32, i32, i32) {
    %c0_i32 = arith.constant 0 : i32
    %c0_i32_0 = arith.constant 0 : i32
    %c0_i32_1 = arith.constant 0 : i32
    %c0_i32_2 = arith.constant 0 : i32
    return %arg0, %c0_i32, %c0_i32_0, %c0_i32_1 : i32, i32, i32, i32
  }
  func.func @transform_6(%arg0: i32) -> (i32, i32, i32, i32) {
    %c0_i32 = arith.constant 0 : i32
    %c0_i32_0 = arith.constant 0 : i32
    %c0_i32_1 = arith.constant 0 : i32
    %c0_i32_2 = arith.constant 0 : i32
    return %arg0, %c0_i32, %c0_i32_0, %c0_i32_1 : i32, i32, i32, i32
  }
}

</mosaic_0001>

<bundles_post_ra>
// kernel: tpu_custom_call.1
= control target key start
LH: loop header
LB: loop body
LE: loop exit
PB: predicated region body
PF: predicated region fallthrough
CT: control target
= control target key end

     0   :  { %12 = vsyncpa [#allocation3], 0  ;;  %s1068_s0 = inlined_call_operand.vmem [shape: f32[2,8,32], index: 0, kind: input, shape index: {}]   ;;  %s1069_s1 = inlined_call_operand.vmem [shape: f32[1,32], index: 1, kind: input, shape index: {}]   ;;  %s1070_s2 = inlined_call_operand.vmem [shape: f32[1,32], index: 2, kind: input, shape index: {}]   ;;  %s1071_s3 = inlined_call_operand.vmem [shape: f32[4,32,8], index: 3, kind: input, shape index: {}]   ;;  %s1072_s4 = inlined_call_operand.vmem [shape: f32[4,32,8], index: 4, kind: input, shape index: {}]   ;;  %s1073_s5 = inlined_call_operand.hbm [shape: f32[2,4,8,8], index: 5, kind: output, shape index: {0}]   ;;  %s1074_s6 = inlined_call_operand.hbm [shape: f32[2,4,8,8], index: 6, kind: output, shape index: {1}]  }
   0x1   :  { %14 = vsyncpa [#allocation3 + $0x1], 0 }
   0x2   :  { %15 = vsyncpa [#allocation5], 0 }
   0x3   :  { %17 = vsyncpa [#allocation5 + $0x1], 0  ;;  %s843_s1 = smov 0   ;;  %s845_s21 = smov 0  }
   0x4   :  { %s847_s2 = smov 0   ;;  %s849_s22 = smov 0  }
   0x5 LB: > { %s864_s23 = sadd.s32 4294967295, %s804_s22   ;;  %s609_s24 = sadd.s32 4294967294, %s804_s22   ;;  %s804_s22 = sphi %s849_s22, %s1080_s22   ;;  %s800_s2 = sphi %s847_s2, %s1079_s2   ;;  %s796_s21 = sphi %s845_s21, %s1078_s21   ;;  %s792_s1 = sphi %s843_s1, %s1077_s1  }
   0x6   : > { %s868_s25 = sadd.s32 1, %s804_s22   ;;  %s140_s26 = sadd.s32 1, %s800_s2 }
   0x7   : > { %s137_s27 = ssub.s32 %s804_s22, %s868_s25  ;;  %p150_p0 = scmp.ne.s32.totalorder %s800_s2, %s796_s21 }
   0x8   : > { %p138_p1 = scmp.eq.s32.totalorder %s137_s27, 0  ;;  %p151_p2 = scmp.eq.s32.totalorder %s864_s23, 1 }
   0x9   : > { %p156_p3 = scmp.ne.s32.totalorder %s796_s21, %s792_s1  ;;  %p157_p4 = scmp.eq.s32.totalorder %s609_s24, 1 }
   0xa   : > { %s879_s28 = scalar_select %p138_p1, %s800_s2, %s140_s26  }
   0xb   : > { %p881_p5 = por %p151_p2, %p150_p0  ;;  %p885_p6 = por %p157_p4, %p156_p3 }
   0xc   : > { %p612_p7 = scmp.ge.s32.totalorder %s804_s22, 1  ;;  %p220_p8 = scmp.lt.s32.totalorder %s804_s22, 3 }
   0xe   : > { %p221_p9 = pnand %p612_p7, %p220_p8 }
   0xf   : > { %p254_p10 = scmp.lt.s32.totalorder (!%p221_p9), %s864_s23, 1  ;;  %s1001_s8 = sand.u32 (!%p221_p9), 1, %s796_s21  }
  0x10   : > { %224 = sbr.rel (%p221_p9) target bundleno = 188 (0xbc), region = 40  ;;  %s613_s9 = sshll.u32 (!%p221_p9), %s1001_s8, 5 }
  0x11   : > { %s662_s10 = sshll.u32 (!%p221_p9), %s864_s23, 5  ;;  %s253_s12 = scalar_lea.vmem (!%p221_p9), [#allocation4], %s613_s9 }
  0x12   : > { %s493_s15 = scalar_lea.hbm (!%p221_p9), %s1073_s5, %s662_s10  ;;  %s511_s20 = sshll.u32 (!%p221_p9), %s253_s12, 4  ;;  %s1019_s20 = int_to_ptr.vmem [resolvable:$true] %s511_s20 }
  0x13   : > { %s496_s19 = sshll.u32 (!%p221_p9), %s493_s15, 4  ;;  %s477_s26 = scalar_lea.sflag (!%p221_p9), [#allocation3], %s1001_s8  ;;  %s497_s19 = int_to_ptr.hbm [resolvable:$true] %s496_s19 }
  0x14   : > { %s730_s13 = scalar_lea.hbm (!%p221_p9), %s1073_s5, 64 }
  0x15   : > { %v621_v0 = vld [vmem:[%s1071_s3 + $0x38] sm:$0xff]  ;;  %v620_v2 = vld [vmem:[%s1071_s3 + $0x30] sm:$0xff]  ;;  %v619_v4 = vld [vmem:[%s1071_s3 + $0x28] sm:$0xff]  ;;  %s255_s27 = scalar_select %p254_p10, %s864_s23, 1  ;;  %vm263_vm0 = vcmask 261120   ;;  %vm287_vm1 = vcmask 64512  }
  0x16   : > { %v627_v1 = vld [vmem:[%s1072_s4 + $0x38] sm:$0xff]  ;;  %331 = vmatpush.msra.mxu2 %v621_v0  ;;  %v626_v3 = vld [vmem:[%s1072_s4 + $0x30] sm:$0xff]  ;;  %v625_v5 = vld [vmem:[%s1072_s4 + $0x28] sm:$0xff]  ;;  %s510_s23 = scalar_lea.hbm %s1074_s6, %s662_s10 }
  0x17   : > { %358 = vmatpush.msra.mxu3 %v627_v1  ;;  %v262_v6 = vld [vmem:[%s1071_s3 + $0x18] sm:$0xff]  ;;  %v618_v8 = vld [vmem:[%s1071_s3 + $0x20] sm:$0xff]  ;;  %s615_s11 = sshll.u32 %s255_s27, 3  ;;  %v261_v10 = vld [vmem:[%s1071_s3 + $0x10] sm:$0xff]  ;;  %s513_s24 = sshll.u32 %s510_s23, 4  ;;  %s1022_s24 = int_to_ptr.hbm [resolvable:$true] %s513_s24 }
  0x18   : > { %v292_v7 = vld [vmem:[%s1072_s4 + $0x18] sm:$0xff]  ;;  %332 = vmatpush.msra.mxu2 %v620_v2  ;;  %279 = vmatpush.msra.mxu0 %v262_v6  ;;  %v624_v9 = vld [vmem:[%s1072_s4 + $0x20] sm:$0xff]  ;;  %v291_v11 = vld [vmem:[%s1072_s4 + $0x10] sm:$0xff]  ;;  %s257_s18 = scalar_lea.vmem %s1068_s0, %s615_s11  ;;  %s246_s11 = scalar_lea.vmem [#allocation2], %s613_s9 }
  0x19   : > { %359 = vmatpush.msra.mxu3 %v626_v3  ;;  %305 = vmatpush.msra.mxu1 %v292_v7  ;;  %v258_v12 = vld [vmem:[%s257_s18] sm:$0xff]  ;;  %v645_v13 = vld [vmem:[%s1071_s3 + $0x78] sm:$0xff]  ;;  %v260_v15 = vld [vmem:[%s1071_s3 + $0x8] sm:$0xff]  ;;  %s494_s18 = sshll.u32 %s246_s11, 4  ;;  %s724_s27 = sshra.s32 %s497_s19, 4  ;;  %s1015_s18 = int_to_ptr.vmem [resolvable:$true] %s494_s18  ;;  %s725_s27 = int_to_ptr.hbm [resolvable:$true] %s724_s27 }
  0x1a   : > { %333 = vmatpush.msra.mxu2 %v619_v4  ;;  %v651_v14 = vld [vmem:[%s1072_s4 + $0x78] sm:$0xff]  ;;  %280 = vmatpush.msra.mxu0 %v261_v10  ;;  %v290_v16 = vld [vmem:[%s1072_s4 + $0x8] sm:$0xff]  ;;  %v644_v17 = vld [vmem:[%s1071_s3 + $0x70] sm:$0xff]  ;;  %s726_s7 = scalar_lea.hbm %s725_s27, 32  ;;  %p731_p0 = scmp.lt.s32.totalorder %s725_s27, %s1073_s5 }
  0x1b   : > { %360 = vmatpush.msra.mxu3 %v625_v5  ;;  %306 = vmatpush.msra.mxu1 %v291_v11  ;;  %v650_v18 = vld [vmem:[%s1072_s4 + $0x70] sm:$0xff]  ;;  %v259_v19 = vld [vmem:[%s1071_s3] sm:$0xff]  ;;  %v643_v21 = vld [vmem:[%s1071_s3 + $0x68] sm:$0xff]  ;;  %p727_p11 = scmp.ne.s32.totalorder %s725_s27, %s726_s7  ;;  %p732_p1 = scmp.lt.s32.totalorder %s730_s13, %s726_s7 }
  0x1c   : > { %334 = vmatpush.msra.mxu2 %v618_v8  ;;  %v289_v20 = vld [vmem:[%s1072_s4] sm:$0xff]  ;;  %281 = vmatpush.msra.mxu0 %v260_v15  ;;  %v649_v22 = vld [vmem:[%s1072_s4 + $0x68] sm:$0xff]  ;;  %v633_v23 = vld [vmem:[%s1071_s3 + $0x58] sm:$0xff] }
  0x1d   : > { %361 = vmatpush.msra.mxu3 %v624_v9  ;;  %622 = vmatmul.msk.f32.vlgmr.msra.gmra.mxu2 %vm263_vm0, %v258_v12  ;;  %v639_v24 = vld [vmem:[%s1072_s4 + $0x58] sm:$0xff]  ;;  %v642_v25 = vld [vmem:[%s1071_s3 + $0x60] sm:$0xff]  ;;  %v632_v27 = vld [vmem:[%s1071_s3 + $0x50] sm:$0xff]  ;;  %p728_p12 = pnand %p727_p11, %p881_p5  ;;  %p733_p2 = por %p732_p1, %p731_p0 }
  0x1e   : > { %628 = vmatmul.msk.f32.vlgmr.msra.gmra.mxu3 %vm263_vm0, %v258_v12  ;;  %439 = vmatpush.msrb.mxu2 %v645_v13  ;;  %v648_v26 = vld [vmem:[%s1072_s4 + $0x60] sm:$0xff]  ;;  %v638_v28 = vld [vmem:[%s1072_s4 + $0x50] sm:$0xff]  ;;  %v631_v29 = vld [vmem:[%s1071_s3 + $0x48] sm:$0xff] }
  0x1f   : > { %466 = vmatpush.msrb.mxu3 %v651_v14  ;;  %307 = vmatpush.msra.mxu1 %v290_v16  ;;  %v637_v30 = vld [vmem:[%s1072_s4 + $0x48] sm:$0xff]  ;;  %v630_v31 = vld [vmem:[%s1071_s3 + $0x40] sm:$0xff]  ;;  %p729_p13 = pneg %p728_p12 }
  0x20   : > { %440 = vmatpush.msrb.mxu2 %v644_v17  ;;  %282 = vmatpush.msra.mxu0 %v259_v19  ;;  %v636_v32 = vld [vmem:[%s1072_s4 + $0x40] sm:$0xff] }
  0x21   : > { %467 = vmatpush.msrb.mxu3 %v650_v18  ;;  %308 = vmatpush.msra.mxu1 %v289_v20  ;;  %p734_p3 = pnand %p733_p2, %p729_p13 }
  0x22   : > { %441 = vmatpush.msrb.mxu2 %v643_v21  ;;  %616 = vmatmul.msk.f32.vlgmr.msra.gmra.mxu0 %vm263_vm0, %v258_v12 }
  0x23   : > { %468 = vmatpush.msrb.mxu3 %v649_v22  ;;  %617 = vmatmul.msk.f32.vlgmr.msra.gmra.mxu1 %vm263_vm0, %v258_v12 }
  0x24   : > { %385 = vmatpush.msrb.mxu0 %v633_v23  ;;  %412 = vmatpush.msrb.mxu1 %v639_v24 }
  0x25   : > { %442 = vmatpush.msrb.mxu2 %v642_v25  ;;  %469 = vmatpush.msrb.mxu3 %v648_v26 }
  0x26   : > { %386 = vmatpush.msrb.mxu0 %v632_v27  ;;  %413 = vmatpush.msrb.mxu1 %v638_v28 }
  0x27   : > { %646 = vmatmul.msk.f32.vlgmr.msrb.gmra.mxu2 %vm263_vm0, %v258_v12  ;;  %652 = vmatmul.msk.f32.vlgmr.msrb.gmra.mxu3 %vm263_vm0, %v258_v12 }
  0x28   : > { %387 = vmatpush.msrb.mxu0 %v631_v29  ;;  %414 = vmatpush.msrb.mxu1 %v637_v30 }
  0x2a   : > { %388 = vmatpush.msrb.mxu0 %v630_v31  ;;  %415 = vmatpush.msrb.mxu1 %v636_v32 }
  0x2b   : > { %634 = vmatmul.msk.f32.vlgmr.msrb.gmra.mxu0 %vm263_vm0, %v258_v12  ;;  %640 = vmatmul.msk.f32.vlgmr.msrb.gmra.mxu1 %vm263_vm0, %v258_v12 }
  0x9f   : > { %v284_v33 = vpop.f32.mrf.mxu0 }
  0xa0   : > { %v310_v34 = vpop.f32.mrf.mxu1  ;;  %288 = vst.msk [vmem:[%s246_s11] sm:$0xff] %vm287_vm1, %v284_v33  ;;  %v336_v35 = vpop.f32.mrf.mxu2 }
  0xa1   : > { %v363_v36 = vpop.f32.mrf.mxu3  ;;  %313 = vst.msk [vmem:[%s253_s12] sm:$0xff] %vm287_vm1, %v310_v34 }
  0xa2   : > { %623 = vst.msk [vmem:[%s246_s11 + $0x8] sm:$0xff] %vm287_vm1, %v336_v35 }
  0xa3   : > { %629 = vst.msk [vmem:[%s253_s12 + $0x8] sm:$0xff] %vm287_vm1, %v363_v36 }
  0xa8   : > { %v390_v37 = vpop.f32.mrf.mxu0  ;;  %v417_v38 = vpop.f32.mrf.mxu1 }
  0xa9   : > { %635 = vst.msk [vmem:[%s246_s11 + $0x10] sm:$0xff] %vm287_vm1, %v390_v37 }
  0xaa   : > { %641 = vst.msk [vmem:[%s253_s12 + $0x10] sm:$0xff] %vm287_vm1, %v417_v38  ;;  %v444_v39 = vpop.f32.mrf.mxu2  ;;  %v471_v40 = vpop.f32.mrf.mxu3 }
  0xab   : > { %647 = vst.msk [vmem:[%s246_s11 + $0x18] sm:$0xff] %vm287_vm1, %v444_v39 }
  0xac   : > { %653 = vst.msk [vmem:[%s253_s12 + $0x18] sm:$0xff] %vm287_vm1, %v471_v40 }
  0xad   : > { %737 = shalt.err (!%p734_p3)
}
  0xae   : > { %s806_s11 = smov 128   ;;  %s807_s12 = smov 8  }
  0xaf   : > { %664 = dma.vmem_to_hbm [thread:$0]  (%p881_p5), %s1015_s18, 512, %s497_s19, %s477_s26, %s806_s11, %s806_s11, %s807_s12  }
  0xb0   : > { %s482_s16 = scalar_lea.sflag [#allocation5], %s1001_s8  ;;  %s752_s17 = sshra.s32 %s1022_s24, 4  ;;  %s753_s17 = int_to_ptr.hbm [resolvable:$true] %s752_s17 }
  0xb1   : > { %s754_s23 = scalar_lea.hbm %s753_s17, 32  ;;  %s758_s9 = scalar_lea.hbm %s1074_s6, 64 }
  0xb2   : > { %p755_p4 = scmp.ne.s32.totalorder %s753_s17, %s754_s23  ;;  %p759_p9 = scmp.lt.s32.totalorder %s753_s17, %s1074_s6 }
  0xb3   : > { %p760_p10 = scmp.lt.s32.totalorder %s758_s9, %s754_s23 }
  0xb4   : > { %p756_p7 = pnand %p755_p4, %p881_p5 }
  0xb5   : > { %p761_p11 = por %p760_p10, %p759_p9 }
  0xb6   : > { %p757_p8 = pneg %p756_p7 }
  0xb8   : > { %p762_p12 = pnand %p761_p11, %p757_p8 }
  0xba   : > { %765 = shalt.err (!%p762_p12)
}
  0xbb   : > { %665 = dma.vmem_to_hbm [thread:$0]  (%p881_p5), %s1019_s20, 512, %s1022_s24, %s482_s16, %s806_s11, %s806_s11, %s807_s12  }
  0xbc PF: > { %p675_p13 = scmp.ge.s32.totalorder %s804_s22, 2  ;;  %s528_s8 = sand.u32 1, %s792_s1  }
  0xbd   : > { %s529_s18 = scalar_lea.sflag [#allocation3], %s528_s8 }
  0xbe   : > { %p669_p0 = pnand %p675_p13, %p885_p6 }
  0xc0   : > { %p670_p1 = pneg %p669_p0 }
  0xc2   : > { %783 = dma.done.wait (%p670_p1), %s529_s18, 512  }
  0xc3   : > { %785 = vsyncadd (%p670_p1), %s529_s18, 4294966784  ;;  %s539_s19 = scalar_lea.sflag [#allocation5], %s528_s8 }
  0xc4   : > { %787 = dma.done.wait (%p670_p1), %s539_s19, 512  }
  0xc5   : > { %789 = vsyncadd (%p670_p1), %s539_s19, 4294966784  ;;  %p20_p5 = scmp.ge.s32.totalorder %s868_s25, 4   ;;  %s1077_s1 = smov %s796_s21 }
  0xc6   : > { %s1078_s21 = smov %s800_s2  ;;  %s1079_s2 = smov %s879_s28 }
  0xc7   : > { %s1080_s22 = smov %s868_s25  ;;  %22 = sbr.rel (!%p20_p5) target bundleno = 5 (0x5), region = 104 }
  0xcc   :  { %545 = vsyncpa [#allocation3], 1 }
  0xcd   :  { %547 = vsyncpa [#allocation3 + $0x1], 1 }
  0xce   :  { %548 = vsyncpa [#allocation5], 1 }
  0xcf   :  { %550 = vsyncpa [#allocation5 + $0x1], 1 }

</bundles_post_ra>
